<compile_context>
chip_gen: v6e
topology: v6e:2x2x1
jax: 0.10.0
libtpu: 0.0.40
codegen_flags: <defaults>
</compile_context>

<pallas_src>
import functools

import jax
import jax.numpy as jnp
from jax.experimental import pallas as pl
from jax.experimental.pallas import tpu as pltpu


def lstm_encoder_kernel(x_ref,      # (B, T*I)  flat time-concatenated input
                        w_ref,      # (I, 4H)   fused input->gate weights, gate order i,f,g,o
                        u_ref,      # (H, 4H)   fused hidden->gate weights
                        b_ref,      # (1, 4H)   fused bias (b_ih + b_hh)
                        h0_ref,     # (B, H)    initial hidden state
                        c0_ref,     # (B, H)    initial cell state
                        enc_ref,    # (B, T*H)  flat time-concatenated hidden outputs
                        *, seq_len, input_size, hidden_size):
    T, I, H = seq_len, input_size, hidden_size

    w = w_ref[...]           # load weights once, reuse across all timesteps
    u = u_ref[...]
    b = b_ref[...]
    h = h0_ref[...]
    c = c0_ref[...]

    # T is a small compile-time constant -> fully unrolled, all slices static.
    for t in range(T):
        x_t = x_ref[:, t * I:(t + 1) * I]                                   # (B, I)

        gates = (jnp.dot(x_t, w, preferred_element_type=jnp.float32)
                 + jnp.dot(h, u, preferred_element_type=jnp.float32)
                 + b)                                                       # (B, 4H)

        i_g = jax.nn.sigmoid(gates[:, 0 * H:1 * H])
        f_g = jax.nn.sigmoid(gates[:, 1 * H:2 * H])
        g_g = jnp.tanh(gates[:, 2 * H:3 * H])
        o_g = jax.nn.sigmoid(gates[:, 3 * H:4 * H])

        c = f_g * c + i_g * g_g
        h = o_g * jnp.tanh(c)

        enc_ref[:, t * H:(t + 1) * H] = h                                   # VMEM store; HBM writeback
                                                                            # happens once, lane-dense.


def encoder_forward(x_bti, w_cat, u_cat, b_cat, h0, c0):
    """x_bti: (B, T, I) like the PyTorch module. Returns (last_out (1,B,H), encoded (B,T,H))."""
    B, T, I = x_bti.shape
    H = h0.shape[1]

    x_flat = x_bti.reshape(B, T * I)          # free row-major reshape (no data movement)

    kernel = functools.partial(lstm_encoder_kernel,
                               seq_len=T, input_size=I, hidden_size=H)

    enc_flat = pl.pallas_call(
        kernel,
        out_shape=jax.ShapeDtypeStruct((B, T * H), jnp.float32),
        grid_spec=pltpu.PrefetchScalarGridSpec(
            num_scalar_prefetch=0,
            grid=(1,),                                         # single invocation; loop inside kernel
            in_specs=[
                pl.BlockSpec((B, T * I), lambda i: (0, 0)),    # flat inputs, fully resident in VMEM
                pl.BlockSpec((I, 4 * H), lambda i: (0, 0)),
                pl.BlockSpec((H, 4 * H), lambda i: (0, 0)),
                pl.BlockSpec((1, 4 * H), lambda i: (0, 0)),
                pl.BlockSpec((B, H), lambda i: (0, 0)),
                pl.BlockSpec((B, H), lambda i: (0, 0)),
            ],
            out_specs=pl.BlockSpec((B, T * H), lambda i: (0, 0)),
        ),
        compiler_params=pltpu.CompilerParams(
            dimension_semantics=("arbitrary",)),               # recurrence is inherently sequential
    )(x_flat, w_cat, u_cat, b_cat, h0, c0)

    encoded = enc_flat.reshape(B, T, H)        # matches PyTorch `input_encoded`
    last_out = encoded[:, -1, :][None]         # (1, B, H), matches PyTorch `_` (== h_T)
    return last_out, encoded


def make_params(key, input_size, hidden_size, batch):
    """Deterministic synthetic parameters mirroring nn.LSTM(input_size, hidden_size)."""
    I, H, B = input_size, hidden_size, batch
    k = 1.0 / jnp.sqrt(jnp.float32(H))
    keys = jax.random.split(key, 6)

    # PyTorch LSTM layout: weight_ih (4H, I), weight_hh (4H, H), biases (4H,), gate order i,f,g,o
    w_ih = jax.random.uniform(keys[0], (4 * H, I), jnp.float32, -k, k)
    w_hh = jax.random.uniform(keys[1], (4 * H, H), jnp.float32, -k, k)
    b_ih = jax.random.uniform(keys[2], (4 * H,), jnp.float32, -k, k)
    b_hh = jax.random.uniform(keys[3], (4 * H,), jnp.float32, -k, k)
    b = b_ih + b_hh

    # Fused kernel layout: columns in gate order i,f,g,o (same ordering as PyTorch rows).
    w_cat = w_ih.T                 # (I, 4H)
    u_cat = w_hh.T                 # (H, 4H)
    b_cat = b.reshape(1, 4 * H)    # (1, 4H)

    # init_hidden: xavier_normal_ on zeros(1, B, H) -> std = sqrt(2 / (fan_in + fan_out))
    std = jnp.sqrt(2.0 / (B * H + H))
    h0 = std * jax.random.normal(keys[4], (B, H), jnp.float32)
    c0 = std * jax.random.normal(keys[5], (B, H), jnp.float32)
    return (w_cat, u_cat, b_cat), h0, c0, (w_ih, w_hh, b)


def reference_forward(x_bti, w_ih, w_hh, b, h0, c0):
    """Pure-JAX reference of the PyTorch loop, for verification."""
    H = h0.shape[1]

    def step(carry, x_t):
        h, c = carry
        gates = x_t @ w_ih.T + h @ w_hh.T + b      # (B, 4H), gate order i,f,g,o
        i_g = jax.nn.sigmoid(gates[:, 0 * H:1 * H])
        f_g = jax.nn.sigmoid(gates[:, 1 * H:2 * H])
        g_g = jnp.tanh(gates[:, 2 * H:3 * H])
        o_g = jax.nn.sigmoid(gates[:, 3 * H:4 * H])
        c_new = f_g * c + i_g * g_g
        h_new = o_g * jnp.tanh(c_new)
        return (h_new, c_new), h_new

    (_, _), hs = jax.lax.scan(step, (h0, c0), jnp.transpose(x_bti, (1, 0, 2)))
    return jnp.transpose(hs, (1, 0, 2))            # (B, T, H)


if __name__ == "__main__":
    B, T, I, H = 2, 8, 16, 32   # batch, seq_len, input_size, hidden_size

    key = jax.random.PRNGKey(0)
    k_x, k_p = jax.random.split(key)
    x = jax.random.normal(k_x, (B, T, I), jnp.float32)

    (w_cat, u_cat, b_cat), h0, c0, (w_ih, w_hh, b) = make_params(k_p, I, H, B)

    last_out, encoded = encoder_forward(x, w_cat, u_cat, b_cat, h0, c0)
    last_out = jax.block_until_ready(last_out)
    encoded = jax.block_until_ready(encoded)

    ref = reference_forward(x, w_ih, w_hh, b, h0, c0)
    assert encoded.shape == (B, T, H)
    assert last_out.shape == (1, B, H)
    assert jnp.allclose(encoded, ref, atol=1e-5, rtol=1e-5)
    assert jnp.allclose(last_out[0], ref[:, -1, :], atol=1e-5, rtol=1e-5)

    print("KERNEL_OK")
</pallas_src>

<mosaic_0001>
module attributes {stable_mosaic.version = 11 : i64} {
  func.func @lstm_encoder_kernel(%arg0: i32, %arg1: memref<2x128xf32, #tpu.memory_space<vmem>>, %arg2: memref<16x128xf32, #tpu.memory_space<vmem>>, %arg3: memref<32x128xf32, #tpu.memory_space<vmem>>, %arg4: memref<1x128xf32, #tpu.memory_space<vmem>>, %arg5: memref<2x32xf32, #tpu.memory_space<vmem>>, %arg6: memref<2x32xf32, #tpu.memory_space<vmem>>, %arg7: memref<2x256xf32, #tpu.memory_space<vmem>>) attributes {dimension_semantics = [#tpu.dimension_semantics<arbitrary>], iteration_bounds = array<i64: 1>, scalar_prefetch = 0 : i64, scratch_operands = 0 : i64, tpu.core_type = #tpu.core_type<tc>, window_params = [{pipeline_mode = #tpu.pipeline_mode<synchronous>, transform_indices = @transform_0, window_bounds = array<i64: 2, 128>}, {pipeline_mode = #tpu.pipeline_mode<synchronous>, transform_indices = @transform_1, window_bounds = array<i64: 16, 128>}, {pipeline_mode = #tpu.pipeline_mode<synchronous>, transform_indices = @transform_2, window_bounds = array<i64: 32, 128>}, {pipeline_mode = #tpu.pipeline_mode<synchronous>, transform_indices = @transform_3, window_bounds = array<i64: 1, 128>}, {pipeline_mode = #tpu.pipeline_mode<synchronous>, transform_indices = @transform_4, window_bounds = array<i64: 2, 32>}, {pipeline_mode = #tpu.pipeline_mode<synchronous>, transform_indices = @transform_5, window_bounds = array<i64: 2, 32>}, {pipeline_mode = #tpu.pipeline_mode<synchronous>, transform_indices = @transform_6, window_bounds = array<i64: 2, 256>}]} {
    %c0 = arith.constant 0 : index
    %c0_0 = arith.constant 0 : index
    %0 = vector.load %arg2[%c0, %c0_0] : memref<16x128xf32, #tpu.memory_space<vmem>>, vector<16x128xf32>
    %c0_1 = arith.constant 0 : index
    %c0_2 = arith.constant 0 : index
    %1 = vector.load %arg3[%c0_1, %c0_2] : memref<32x128xf32, #tpu.memory_space<vmem>>, vector<32x128xf32>
    %c0_3 = arith.constant 0 : index
    %c0_4 = arith.constant 0 : index
    %2 = vector.load %arg4[%c0_3, %c0_4] : memref<1x128xf32, #tpu.memory_space<vmem>>, vector<1x128xf32>
    %c0_5 = arith.constant 0 : index
    %c0_6 = arith.constant 0 : index
    %3 = vector.load %arg5[%c0_5, %c0_6] : memref<2x32xf32, #tpu.memory_space<vmem>>, vector<2x32xf32>
    %c0_7 = arith.constant 0 : index
    %c0_8 = arith.constant 0 : index
    %4 = vector.load %arg6[%c0_7, %c0_8] : memref<2x32xf32, #tpu.memory_space<vmem>>, vector<2x32xf32>
    %c0_9 = arith.constant 0 : index
    %c0_10 = arith.constant 0 : index
    %5 = vector.load %arg1[%c0_9, %c0_10] : memref<2x128xf32, #tpu.memory_space<vmem>>, vector<2x16xf32>
    %cst = arith.constant dense<0.000000e+00> : vector<2x128xf32>
    %6 = tpu.matmul %5, %0, %cst {dimension_numbers = #tpu.dot_dimension_numbers<[1], [0], [0], [1], [0, 0, 1, 1], [], []>} : vector<2x16xf32>, vector<16x128xf32>, vector<2x128xf32> -> vector<2x128xf32>
    %cst_11 = arith.constant dense<0.000000e+00> : vector<2x128xf32>
    %7 = tpu.matmul %3, %1, %cst_11 {dimension_numbers = #tpu.dot_dimension_numbers<[1], [0], [0], [1], [0, 0, 1, 1], [], []>} : vector<2x32xf32>, vector<32x128xf32>, vector<2x128xf32> -> vector<2x128xf32>
    %8 = arith.addf %6, %7 : vector<2x128xf32>
    %9 = vector.broadcast %2 : vector<1x128xf32> to vector<2x128xf32>
    %10 = arith.addf %8, %9 : vector<2x128xf32>
    %11 = vector.extract_strided_slice %10 {offsets = [0, 0], sizes = [2, 32], strides = [1, 1]} : vector<2x128xf32> to vector<2x32xf32>
    %12 = arith.negf %11 : vector<2x32xf32>
    %13 = math.exp %12 : vector<2x32xf32>
    %cst_12 = arith.constant 1.000000e+00 : f32
    %14 = vector.broadcast %cst_12 : f32 to vector<2x32xf32>
    %15 = arith.addf %14, %13 : vector<2x32xf32>
    %16 = arith.divf %14, %15 : vector<2x32xf32>
    %17 = vector.extract_strided_slice %10 {offsets = [0, 32], sizes = [2, 32], strides = [1, 1]} : vector<2x128xf32> to vector<2x32xf32>
    %18 = arith.negf %17 : vector<2x32xf32>
    %19 = math.exp %18 : vector<2x32xf32>
    %cst_13 = arith.constant 1.000000e+00 : f32
    %20 = vector.broadcast %cst_13 : f32 to vector<2x32xf32>
    %21 = arith.addf %20, %19 : vector<2x32xf32>
    %22 = arith.divf %20, %21 : vector<2x32xf32>
    %23 = vector.extract_strided_slice %10 {offsets = [0, 64], sizes = [2, 32], strides = [1, 1]} : vector<2x128xf32> to vector<2x32xf32>
    %24 = math.tanh %23 : vector<2x32xf32>
    %25 = vector.extract_strided_slice %10 {offsets = [0, 96], sizes = [2, 32], strides = [1, 1]} : vector<2x128xf32> to vector<2x32xf32>
    %26 = arith.negf %25 : vector<2x32xf32>
    %27 = math.exp %26 : vector<2x32xf32>
    %cst_14 = arith.constant 1.000000e+00 : f32
    %28 = vector.broadcast %cst_14 : f32 to vector<2x32xf32>
    %29 = arith.addf %28, %27 : vector<2x32xf32>
    %30 = arith.divf %28, %29 : vector<2x32xf32>
    %31 = arith.mulf %22, %4 : vector<2x32xf32>
    %32 = arith.mulf %16, %24 : vector<2x32xf32>
    %33 = arith.addf %31, %32 : vector<2x32xf32>
    %34 = math.tanh %33 : vector<2x32xf32>
    %35 = arith.mulf %30, %34 : vector<2x32xf32>
    %c0_15 = arith.constant 0 : index
    %c0_16 = arith.constant 0 : index
    %36 = vector.load %arg7[%c0_15, %c0_16] : memref<2x256xf32, #tpu.memory_space<vmem>>, vector<2x32xf32>
    tpu.vector_store %arg7[%c0_15, %c0_16], %35 {strides = array<i32>} : memref<2x256xf32, #tpu.memory_space<vmem>>, vector<2x32xf32>,
    %c0_17 = arith.constant 0 : index
    %c16 = arith.constant 16 : index
    %37 = vector.load %arg1[%c0_17, %c16] : memref<2x128xf32, #tpu.memory_space<vmem>>, vector<2x16xf32>
    %cst_18 = arith.constant dense<0.000000e+00> : vector<2x128xf32>
    %38 = tpu.matmul %37, %0, %cst_18 {dimension_numbers = #tpu.dot_dimension_numbers<[1], [0], [0], [1], [0, 0, 1, 1], [], []>} : vector<2x16xf32>, vector<16x128xf32>, vector<2x128xf32> -> vector<2x128xf32>
    %cst_19 = arith.constant dense<0.000000e+00> : vector<2x128xf32>
    %39 = tpu.matmul %35, %1, %cst_19 {dimension_numbers = #tpu.dot_dimension_numbers<[1], [0], [0], [1], [0, 0, 1, 1], [], []>} : vector<2x32xf32>, vector<32x128xf32>, vector<2x128xf32> -> vector<2x128xf32>
    %40 = arith.addf %38, %39 : vector<2x128xf32>
    %41 = vector.broadcast %2 : vector<1x128xf32> to vector<2x128xf32>
    %42 = arith.addf %40, %41 : vector<2x128xf32>
    %43 = vector.extract_strided_slice %42 {offsets = [0, 0], sizes = [2, 32], strides = [1, 1]} : vector<2x128xf32> to vector<2x32xf32>
    %44 = arith.negf %43 : vector<2x32xf32>
    %45 = math.exp %44 : vector<2x32xf32>
    %cst_20 = arith.constant 1.000000e+00 : f32
    %46 = vector.broadcast %cst_20 : f32 to vector<2x32xf32>
    %47 = arith.addf %46, %45 : vector<2x32xf32>
    %48 = arith.divf %46, %47 : vector<2x32xf32>
    %49 = vector.extract_strided_slice %42 {offsets = [0, 32], sizes = [2, 32], strides = [1, 1]} : vector<2x128xf32> to vector<2x32xf32>
    %50 = arith.negf %49 : vector<2x32xf32>
    %51 = math.exp %50 : vector<2x32xf32>
    %cst_21 = arith.constant 1.000000e+00 : f32
    %52 = vector.broadcast %cst_21 : f32 to vector<2x32xf32>
    %53 = arith.addf %52, %51 : vector<2x32xf32>
    %54 = arith.divf %52, %53 : vector<2x32xf32>
    %55 = vector.extract_strided_slice %42 {offsets = [0, 64], sizes = [2, 32], strides = [1, 1]} : vector<2x128xf32> to vector<2x32xf32>
    %56 = math.tanh %55 : vector<2x32xf32>
    %57 = vector.extract_strided_slice %42 {offsets = [0, 96], sizes = [2, 32], strides = [1, 1]} : vector<2x128xf32> to vector<2x32xf32>
    %58 = arith.negf %57 : vector<2x32xf32>
    %59 = math.exp %58 : vector<2x32xf32>
    %cst_22 = arith.constant 1.000000e+00 : f32
    %60 = vector.broadcast %cst_22 : f32 to vector<2x32xf32>
    %61 = arith.addf %60, %59 : vector<2x32xf32>
    %62 = arith.divf %60, %61 : vector<2x32xf32>
    %63 = arith.mulf %54, %33 : vector<2x32xf32>
    %64 = arith.mulf %48, %56 : vector<2x32xf32>
    %65 = arith.addf %63, %64 : vector<2x32xf32>
    %66 = math.tanh %65 : vector<2x32xf32>
    %67 = arith.mulf %62, %66 : vector<2x32xf32>
    %c0_23 = arith.constant 0 : index
    %c32 = arith.constant 32 : index
    %68 = vector.load %arg7[%c0_23, %c32] : memref<2x256xf32, #tpu.memory_space<vmem>>, vector<2x32xf32>
    tpu.vector_store %arg7[%c0_23, %c32], %67 {strides = array<i32>} : memref<2x256xf32, #tpu.memory_space<vmem>>, vector<2x32xf32>,
    %c0_24 = arith.constant 0 : index
    %c32_25 = arith.constant 32 : index
    %69 = vector.load %arg1[%c0_24, %c32_25] : memref<2x128xf32, #tpu.memory_space<vmem>>, vector<2x16xf32>
    %cst_26 = arith.constant dense<0.000000e+00> : vector<2x128xf32>
    %70 = tpu.matmul %69, %0, %cst_26 {dimension_numbers = #tpu.dot_dimension_numbers<[1], [0], [0], [1], [0, 0, 1, 1], [], []>} : vector<2x16xf32>, vector<16x128xf32>, vector<2x128xf32> -> vector<2x128xf32>
    %cst_27 = arith.constant dense<0.000000e+00> : vector<2x128xf32>
    %71 = tpu.matmul %67, %1, %cst_27 {dimension_numbers = #tpu.dot_dimension_numbers<[1], [0], [0], [1], [0, 0, 1, 1], [], []>} : vector<2x32xf32>, vector<32x128xf32>, vector<2x128xf32> -> vector<2x128xf32>
    %72 = arith.addf %70, %71 : vector<2x128xf32>
    %73 = vector.broadcast %2 : vector<1x128xf32> to vector<2x128xf32>
    %74 = arith.addf %72, %73 : vector<2x128xf32>
    %75 = vector.extract_strided_slice %74 {offsets = [0, 0], sizes = [2, 32], strides = [1, 1]} : vector<2x128xf32> to vector<2x32xf32>
    %76 = arith.negf %75 : vector<2x32xf32>
    %77 = math.exp %76 : vector<2x32xf32>
    %cst_28 = arith.constant 1.000000e+00 : f32
    %78 = vector.broadcast %cst_28 : f32 to vector<2x32xf32>
    %79 = arith.addf %78, %77 : vector<2x32xf32>
    %80 = arith.divf %78, %79 : vector<2x32xf32>
    %81 = vector.extract_strided_slice %74 {offsets = [0, 32], sizes = [2, 32], strides = [1, 1]} : vector<2x128xf32> to vector<2x32xf32>
    %82 = arith.negf %81 : vector<2x32xf32>
    %83 = math.exp %82 : vector<2x32xf32>
    %cst_29 = arith.constant 1.000000e+00 : f32
    %84 = vector.broadcast %cst_29 : f32 to vector<2x32xf32>
    %85 = arith.addf %84, %83 : vector<2x32xf32>
    %86 = arith.divf %84, %85 : vector<2x32xf32>
    %87 = vector.extract_strided_slice %74 {offsets = [0, 64], sizes = [2, 32], strides = [1, 1]} : vector<2x128xf32> to vector<2x32xf32>
    %88 = math.tanh %87 : vector<2x32xf32>
    %89 = vector.extract_strided_slice %74 {offsets = [0, 96], sizes = [2, 32], strides = [1, 1]} : vector<2x128xf32> to vector<2x32xf32>
    %90 = arith.negf %89 : vector<2x32xf32>
    %91 = math.exp %90 : vector<2x32xf32>
    %cst_30 = arith.constant 1.000000e+00 : f32
    %92 = vector.broadcast %cst_30 : f32 to vector<2x32xf32>
    %93 = arith.addf %92, %91 : vector<2x32xf32>
    %94 = arith.divf %92, %93 : vector<2x32xf32>
    %95 = arith.mulf %86, %65 : vector<2x32xf32>
    %96 = arith.mulf %80, %88 : vector<2x32xf32>
    %97 = arith.addf %95, %96 : vector<2x32xf32>
    %98 = math.tanh %97 : vector<2x32xf32>
    %99 = arith.mulf %94, %98 : vector<2x32xf32>
    %c0_31 = arith.constant 0 : index
    %c64 = arith.constant 64 : index
    %100 = vector.load %arg7[%c0_31, %c64] : memref<2x256xf32, #tpu.memory_space<vmem>>, vector<2x32xf32>
    tpu.vector_store %arg7[%c0_31, %c64], %99 {strides = array<i32>} : memref<2x256xf32, #tpu.memory_space<vmem>>, vector<2x32xf32>,
    %c0_32 = arith.constant 0 : index
    %c48 = arith.constant 48 : index
    %101 = vector.load %arg1[%c0_32, %c48] : memref<2x128xf32, #tpu.memory_space<vmem>>, vector<2x16xf32>
    %cst_33 = arith.constant dense<0.000000e+00> : vector<2x128xf32>
    %102 = tpu.matmul %101, %0, %cst_33 {dimension_numbers = #tpu.dot_dimension_numbers<[1], [0], [0], [1], [0, 0, 1, 1], [], []>} : vector<2x16xf32>, vector<16x128xf32>, vector<2x128xf32> -> vector<2x128xf32>
    %cst_34 = arith.constant dense<0.000000e+00> : vector<2x128xf32>
    %103 = tpu.matmul %99, %1, %cst_34 {dimension_numbers = #tpu.dot_dimension_numbers<[1], [0], [0], [1], [0, 0, 1, 1], [], []>} : vector<2x32xf32>, vector<32x128xf32>, vector<2x128xf32> -> vector<2x128xf32>
    %104 = arith.addf %102, %103 : vector<2x128xf32>
    %105 = vector.broadcast %2 : vector<1x128xf32> to vector<2x128xf32>
    %106 = arith.addf %104, %105 : vector<2x128xf32>
    %107 = vector.extract_strided_slice %106 {offsets = [0, 0], sizes = [2, 32], strides = [1, 1]} : vector<2x128xf32> to vector<2x32xf32>
    %108 = arith.negf %107 : vector<2x32xf32>
    %109 = math.exp %108 : vector<2x32xf32>
    %cst_35 = arith.constant 1.000000e+00 : f32
    %110 = vector.broadcast %cst_35 : f32 to vector<2x32xf32>
    %111 = arith.addf %110, %109 : vector<2x32xf32>
    %112 = arith.divf %110, %111 : vector<2x32xf32>
    %113 = vector.extract_strided_slice %106 {offsets = [0, 32], sizes = [2, 32], strides = [1, 1]} : vector<2x128xf32> to vector<2x32xf32>
    %114 = arith.negf %113 : vector<2x32xf32>
    %115 = math.exp %114 : vector<2x32xf32>
    %cst_36 = arith.constant 1.000000e+00 : f32
    %116 = vector.broadcast %cst_36 : f32 to vector<2x32xf32>
    %117 = arith.addf %116, %115 : vector<2x32xf32>
    %118 = arith.divf %116, %117 : vector<2x32xf32>
    %119 = vector.extract_strided_slice %106 {offsets = [0, 64], sizes = [2, 32], strides = [1, 1]} : vector<2x128xf32> to vector<2x32xf32>
    %120 = math.tanh %119 : vector<2x32xf32>
    %121 = vector.extract_strided_slice %106 {offsets = [0, 96], sizes = [2, 32], strides = [1, 1]} : vector<2x128xf32> to vector<2x32xf32>
    %122 = arith.negf %121 : vector<2x32xf32>
    %123 = math.exp %122 : vector<2x32xf32>
    %cst_37 = arith.constant 1.000000e+00 : f32
    %124 = vector.broadcast %cst_37 : f32 to vector<2x32xf32>
    %125 = arith.addf %124, %123 : vector<2x32xf32>
    %126 = arith.divf %124, %125 : vector<2x32xf32>
    %127 = arith.mulf %118, %97 : vector<2x32xf32>
    %128 = arith.mulf %112, %120 : vector<2x32xf32>
    %129 = arith.addf %127, %128 : vector<2x32xf32>
    %130 = math.tanh %129 : vector<2x32xf32>
    %131 = arith.mulf %126, %130 : vector<2x32xf32>
    %c0_38 = arith.constant 0 : index
    %c96 = arith.constant 96 : index
    %132 = vector.load %arg7[%c0_38, %c96] : memref<2x256xf32, #tpu.memory_space<vmem>>, vector<2x32xf32>
    tpu.vector_store %arg7[%c0_38, %c96], %131 {strides = array<i32>} : memref<2x256xf32, #tpu.memory_space<vmem>>, vector<2x32xf32>,
    %c0_39 = arith.constant 0 : index
    %c64_40 = arith.constant 64 : index
    %133 = vector.load %arg1[%c0_39, %c64_40] : memref<2x128xf32, #tpu.memory_space<vmem>>, vector<2x16xf32>
    %cst_41 = arith.constant dense<0.000000e+00> : vector<2x128xf32>
    %134 = tpu.matmul %133, %0, %cst_41 {dimension_numbers = #tpu.dot_dimension_numbers<[1], [0], [0], [1], [0, 0, 1, 1], [], []>} : vector<2x16xf32>, vector<16x128xf32>, vector<2x128xf32> -> vector<2x128xf32>
    %cst_42 = arith.constant dense<0.000000e+00> : vector<2x128xf32>
    %135 = tpu.matmul %131, %1, %cst_42 {dimension_numbers = #tpu.dot_dimension_numbers<[1], [0], [0], [1], [0, 0, 1, 1], [], []>} : vector<2x32xf32>, vector<32x128xf32>, vector<2x128xf32> -> vector<2x128xf32>
    %136 = arith.addf %134, %135 : vector<2x128xf32>
    %137 = vector.broadcast %2 : vector<1x128xf32> to vector<2x128xf32>
    %138 = arith.addf %136, %137 : vector<2x128xf32>
    %139 = vector.extract_strided_slice %138 {offsets = [0, 0], sizes = [2, 32], strides = [1, 1]} : vector<2x128xf32> to vector<2x32xf32>
    %140 = arith.negf %139 : vector<2x32xf32>
    %141 = math.exp %140 : vector<2x32xf32>
    %cst_43 = arith.constant 1.000000e+00 : f32
    %142 = vector.broadcast %cst_43 : f32 to vector<2x32xf32>
    %143 = arith.addf %142, %141 : vector<2x32xf32>
    %144 = arith.divf %142, %143 : vector<2x32xf32>
    %145 = vector.extract_strided_slice %138 {offsets = [0, 32], sizes = [2, 32], strides = [1, 1]} : vector<2x128xf32> to vector<2x32xf32>
    %146 = arith.negf %145 : vector<2x32xf32>
    %147 = math.exp %146 : vector<2x32xf32>
    %cst_44 = arith.constant 1.000000e+00 : f32
    %148 = vector.broadcast %cst_44 : f32 to vector<2x32xf32>
    %149 = arith.addf %148, %147 : vector<2x32xf32>
    %150 = arith.divf %148, %149 : vector<2x32xf32>
    %151 = vector.extract_strided_slice %138 {offsets = [0, 64], sizes = [2, 32], strides = [1, 1]} : vector<2x128xf32> to vector<2x32xf32>
    %152 = math.tanh %151 : vector<2x32xf32>
    %153 = vector.extract_strided_slice %138 {offsets = [0, 96], sizes = [2, 32], strides = [1, 1]} : vector<2x128xf32> to vector<2x32xf32>
    %154 = arith.negf %153 : vector<2x32xf32>
    %155 = math.exp %154 : vector<2x32xf32>
    %cst_45 = arith.constant 1.000000e+00 : f32
    %156 = vector.broadcast %cst_45 : f32 to vector<2x32xf32>
    %157 = arith.addf %156, %155 : vector<2x32xf32>
    %158 = arith.divf %156, %157 : vector<2x32xf32>
    %159 = arith.mulf %150, %129 : vector<2x32xf32>
    %160 = arith.mulf %144, %152 : vector<2x32xf32>
    %161 = arith.addf %159, %160 : vector<2x32xf32>
    %162 = math.tanh %161 : vector<2x32xf32>
    %163 = arith.mulf %158, %162 : vector<2x32xf32>
    %c0_46 = arith.constant 0 : index
    %c128 = arith.constant 128 : index
    %164 = vector.load %arg7[%c0_46, %c128] : memref<2x256xf32, #tpu.memory_space<vmem>>, vector<2x32xf32>
    tpu.vector_store %arg7[%c0_46, %c128], %163 {strides = array<i32>} : memref<2x256xf32, #tpu.memory_space<vmem>>, vector<2x32xf32>,
    %c0_47 = arith.constant 0 : index
    %c80 = arith.constant 80 : index
    %165 = vector.load %arg1[%c0_47, %c80] : memref<2x128xf32, #tpu.memory_space<vmem>>, vector<2x16xf32>
    %cst_48 = arith.constant dense<0.000000e+00> : vector<2x128xf32>
    %166 = tpu.matmul %165, %0, %cst_48 {dimension_numbers = #tpu.dot_dimension_numbers<[1], [0], [0], [1], [0, 0, 1, 1], [], []>} : vector<2x16xf32>, vector<16x128xf32>, vector<2x128xf32> -> vector<2x128xf32>
    %cst_49 = arith.constant dense<0.000000e+00> : vector<2x128xf32>
    %167 = tpu.matmul %163, %1, %cst_49 {dimension_numbers = #tpu.dot_dimension_numbers<[1], [0], [0], [1], [0, 0, 1, 1], [], []>} : vector<2x32xf32>, vector<32x128xf32>, vector<2x128xf32> -> vector<2x128xf32>
    %168 = arith.addf %166, %167 : vector<2x128xf32>
    %169 = vector.broadcast %2 : vector<1x128xf32> to vector<2x128xf32>
    %170 = arith.addf %168, %169 : vector<2x128xf32>
    %171 = vector.extract_strided_slice %170 {offsets = [0, 0], sizes = [2, 32], strides = [1, 1]} : vector<2x128xf32> to vector<2x32xf32>
    %172 = arith.negf %171 : vector<2x32xf32>
    %173 = math.exp %172 : vector<2x32xf32>
    %cst_50 = arith.constant 1.000000e+00 : f32
    %174 = vector.broadcast %cst_50 : f32 to vector<2x32xf32>
    %175 = arith.addf %174, %173 : vector<2x32xf32>
    %176 = arith.divf %174, %175 : vector<2x32xf32>
    %177 = vector.extract_strided_slice %170 {offsets = [0, 32], sizes = [2, 32], strides = [1, 1]} : vector<2x128xf32> to vector<2x32xf32>
    %178 = arith.negf %177 : vector<2x32xf32>
    %179 = math.exp %178 : vector<2x32xf32>
    %cst_51 = arith.constant 1.000000e+00 : f32
    %180 = vector.broadcast %cst_51 : f32 to vector<2x32xf32>
    %181 = arith.addf %180, %179 : vector<2x32xf32>
    %182 = arith.divf %180, %181 : vector<2x32xf32>
    %183 = vector.extract_strided_slice %170 {offsets = [0, 64], sizes = [2, 32], strides = [1, 1]} : vector<2x128xf32> to vector<2x32xf32>
    %184 = math.tanh %183 : vector<2x32xf32>
    %185 = vector.extract_strided_slice %170 {offsets = [0, 96], sizes = [2, 32], strides = [1, 1]} : vector<2x128xf32> to vector<2x32xf32>
    %186 = arith.negf %185 : vector<2x32xf32>
    %187 = math.exp %186 : vector<2x32xf32>
    %cst_52 = arith.constant 1.000000e+00 : f32
    %188 = vector.broadcast %cst_52 : f32 to vector<2x32xf32>
    %189 = arith.addf %188, %187 : vector<2x32xf32>
    %190 = arith.divf %188, %189 : vector<2x32xf32>
    %191 = arith.mulf %182, %161 : vector<2x32xf32>
    %192 = arith.mulf %176, %184 : vector<2x32xf32>
    %193 = arith.addf %191, %192 : vector<2x32xf32>
    %194 = math.tanh %193 : vector<2x32xf32>
    %195 = arith.mulf %190, %194 : vector<2x32xf32>
    %c0_53 = arith.constant 0 : index
    %c160 = arith.constant 160 : index
    %196 = vector.load %arg7[%c0_53, %c160] : memref<2x256xf32, #tpu.memory_space<vmem>>, vector<2x32xf32>
    tpu.vector_store %arg7[%c0_53, %c160], %195 {strides = array<i32>} : memref<2x256xf32, #tpu.memory_space<vmem>>, vector<2x32xf32>,
    %c0_54 = arith.constant 0 : index
    %c96_55 = arith.constant 96 : index
    %197 = vector.load %arg1[%c0_54, %c96_55] : memref<2x128xf32, #tpu.memory_space<vmem>>, vector<2x16xf32>
    %cst_56 = arith.constant dense<0.000000e+00> : vector<2x128xf32>
    %198 = tpu.matmul %197, %0, %cst_56 {dimension_numbers = #tpu.dot_dimension_numbers<[1], [0], [0], [1], [0, 0, 1, 1], [], []>} : vector<2x16xf32>, vector<16x128xf32>, vector<2x128xf32> -> vector<2x128xf32>
    %cst_57 = arith.constant dense<0.000000e+00> : vector<2x128xf32>
    %199 = tpu.matmul %195, %1, %cst_57 {dimension_numbers = #tpu.dot_dimension_numbers<[1], [0], [0], [1], [0, 0, 1, 1], [], []>} : vector<2x32xf32>, vector<32x128xf32>, vector<2x128xf32> -> vector<2x128xf32>
    %200 = arith.addf %198, %199 : vector<2x128xf32>
    %201 = vector.broadcast %2 : vector<1x128xf32> to vector<2x128xf32>
    %202 = arith.addf %200, %201 : vector<2x128xf32>
    %203 = vector.extract_strided_slice %202 {offsets = [0, 0], sizes = [2, 32], strides = [1, 1]} : vector<2x128xf32> to vector<2x32xf32>
    %204 = arith.negf %203 : vector<2x32xf32>
    %205 = math.exp %204 : vector<2x32xf32>
    %cst_58 = arith.constant 1.000000e+00 : f32
    %206 = vector.broadcast %cst_58 : f32 to vector<2x32xf32>
    %207 = arith.addf %206, %205 : vector<2x32xf32>
    %208 = arith.divf %206, %207 : vector<2x32xf32>
    %209 = vector.extract_strided_slice %202 {offsets = [0, 32], sizes = [2, 32], strides = [1, 1]} : vector<2x128xf32> to vector<2x32xf32>
    %210 = arith.negf %209 : vector<2x32xf32>
    %211 = math.exp %210 : vector<2x32xf32>
    %cst_59 = arith.constant 1.000000e+00 : f32
    %212 = vector.broadcast %cst_59 : f32 to vector<2x32xf32>
    %213 = arith.addf %212, %211 : vector<2x32xf32>
    %214 = arith.divf %212, %213 : vector<2x32xf32>
    %215 = vector.extract_strided_slice %202 {offsets = [0, 64], sizes = [2, 32], strides = [1, 1]} : vector<2x128xf32> to vector<2x32xf32>
    %216 = math.tanh %215 : vector<2x32xf32>
    %217 = vector.extract_strided_slice %202 {offsets = [0, 96], sizes = [2, 32], strides = [1, 1]} : vector<2x128xf32> to vector<2x32xf32>
    %218 = arith.negf %217 : vector<2x32xf32>
    %219 = math.exp %218 : vector<2x32xf32>
    %cst_60 = arith.constant 1.000000e+00 : f32
    %220 = vector.broadcast %cst_60 : f32 to vector<2x32xf32>
    %221 = arith.addf %220, %219 : vector<2x32xf32>
    %222 = arith.divf %220, %221 : vector<2x32xf32>
    %223 = arith.mulf %214, %193 : vector<2x32xf32>
    %224 = arith.mulf %208, %216 : vector<2x32xf32>
    %225 = arith.addf %223, %224 : vector<2x32xf32>
    %226 = math.tanh %225 : vector<2x32xf32>
    %227 = arith.mulf %222, %226 : vector<2x32xf32>
    %c0_61 = arith.constant 0 : index
    %c192 = arith.constant 192 : index
    %228 = vector.load %arg7[%c0_61, %c192] : memref<2x256xf32, #tpu.memory_space<vmem>>, vector<2x32xf32>
    tpu.vector_store %arg7[%c0_61, %c192], %227 {strides = array<i32>} : memref<2x256xf32, #tpu.memory_space<vmem>>, vector<2x32xf32>,
    %c0_62 = arith.constant 0 : index
    %c112 = arith.constant 112 : index
    %229 = vector.load %arg1[%c0_62, %c112] : memref<2x128xf32, #tpu.memory_space<vmem>>, vector<2x16xf32>
    %cst_63 = arith.constant dense<0.000000e+00> : vector<2x128xf32>
    %230 = tpu.matmul %229, %0, %cst_63 {dimension_numbers = #tpu.dot_dimension_numbers<[1], [0], [0], [1], [0, 0, 1, 1], [], []>} : vector<2x16xf32>, vector<16x128xf32>, vector<2x128xf32> -> vector<2x128xf32>
    %cst_64 = arith.constant dense<0.000000e+00> : vector<2x128xf32>
    %231 = tpu.matmul %227, %1, %cst_64 {dimension_numbers = #tpu.dot_dimension_numbers<[1], [0], [0], [1], [0, 0, 1, 1], [], []>} : vector<2x32xf32>, vector<32x128xf32>, vector<2x128xf32> -> vector<2x128xf32>
    %232 = arith.addf %230, %231 : vector<2x128xf32>
    %233 = vector.broadcast %2 : vector<1x128xf32> to vector<2x128xf32>
    %234 = arith.addf %232, %233 : vector<2x128xf32>
    %235 = vector.extract_strided_slice %234 {offsets = [0, 0], sizes = [2, 32], strides = [1, 1]} : vector<2x128xf32> to vector<2x32xf32>
    %236 = arith.negf %235 : vector<2x32xf32>
    %237 = math.exp %236 : vector<2x32xf32>
    %cst_65 = arith.constant 1.000000e+00 : f32
    %238 = vector.broadcast %cst_65 : f32 to vector<2x32xf32>
    %239 = arith.addf %238, %237 : vector<2x32xf32>
    %240 = arith.divf %238, %239 : vector<2x32xf32>
    %241 = vector.extract_strided_slice %234 {offsets = [0, 32], sizes = [2, 32], strides = [1, 1]} : vector<2x128xf32> to vector<2x32xf32>
    %242 = arith.negf %241 : vector<2x32xf32>
    %243 = math.exp %242 : vector<2x32xf32>
    %cst_66 = arith.constant 1.000000e+00 : f32
    %244 = vector.broadcast %cst_66 : f32 to vector<2x32xf32>
    %245 = arith.addf %244, %243 : vector<2x32xf32>
    %246 = arith.divf %244, %245 : vector<2x32xf32>
    %247 = vector.extract_strided_slice %234 {offsets = [0, 64], sizes = [2, 32], strides = [1, 1]} : vector<2x128xf32> to vector<2x32xf32>
    %248 = math.tanh %247 : vector<2x32xf32>
    %249 = vector.extract_strided_slice %234 {offsets = [0, 96], sizes = [2, 32], strides = [1, 1]} : vector<2x128xf32> to vector<2x32xf32>
    %250 = arith.negf %249 : vector<2x32xf32>
    %251 = math.exp %250 : vector<2x32xf32>
    %cst_67 = arith.constant 1.000000e+00 : f32
    %252 = vector.broadcast %cst_67 : f32 to vector<2x32xf32>
    %253 = arith.addf %252, %251 : vector<2x32xf32>
    %254 = arith.divf %252, %253 : vector<2x32xf32>
    %255 = arith.mulf %246, %225 : vector<2x32xf32>
    %256 = arith.mulf %240, %248 : vector<2x32xf32>
    %257 = arith.addf %255, %256 : vector<2x32xf32>
    %258 = math.tanh %257 : vector<2x32xf32>
    %259 = arith.mulf %254, %258 : vector<2x32xf32>
    %c0_68 = arith.constant 0 : index
    %c224 = arith.constant 224 : index
    %260 = vector.load %arg7[%c0_68, %c224] : memref<2x256xf32, #tpu.memory_space<vmem>>, vector<2x32xf32>
    tpu.vector_store %arg7[%c0_68, %c224], %259 {strides = array<i32>} : memref<2x256xf32, #tpu.memory_space<vmem>>, vector<2x32xf32>,
    return
  }
  func.func @transform_0(%arg0: i32) -> (i32, i32) {
    %c0_i32 = arith.constant 0 : i32
    %c0_i32_0 = arith.constant 0 : i32
    %c0_i32_1 = arith.constant 0 : i32
    return %c0_i32, %c0_i32_0 : i32, i32
  }
  func.func @transform_1(%arg0: i32) -> (i32, i32) {
    %c0_i32 = arith.constant 0 : i32
    %c0_i32_0 = arith.constant 0 : i32
    %c0_i32_1 = arith.constant 0 : i32
    return %c0_i32, %c0_i32_0 : i32, i32
  }
  func.func @transform_2(%arg0: i32) -> (i32, i32) {
    %c0_i32 = arith.constant 0 : i32
    %c0_i32_0 = arith.constant 0 : i32
    %c0_i32_1 = arith.constant 0 : i32
    return %c0_i32, %c0_i32_0 : i32, i32
  }
  func.func @transform_3(%arg0: i32) -> (i32, i32) {
    %c0_i32 = arith.constant 0 : i32
    %c0_i32_0 = arith.constant 0 : i32
    %c0_i32_1 = arith.constant 0 : i32
    return %c0_i32, %c0_i32_0 : i32, i32
  }
  func.func @transform_4(%arg0: i32) -> (i32, i32) {
    %c0_i32 = arith.constant 0 : i32
    %c0_i32_0 = arith.constant 0 : i32
    %c0_i32_1 = arith.constant 0 : i32
    return %c0_i32, %c0_i32_0 : i32, i32
  }
  func.func @transform_5(%arg0: i32) -> (i32, i32) {
    %c0_i32 = arith.constant 0 : i32
    %c0_i32_0 = arith.constant 0 : i32
    %c0_i32_1 = arith.constant 0 : i32
    return %c0_i32, %c0_i32_0 : i32, i32
  }
  func.func @transform_6(%arg0: i32) -> (i32, i32) {
    %c0_i32 = arith.constant 0 : i32
    %c0_i32_0 = arith.constant 0 : i32
    %c0_i32_1 = arith.constant 0 : i32
    return %c0_i32, %c0_i32_0 : i32, i32
  }
}

</mosaic_0001>

<bundles_post_ra>
// kernel: tpu_custom_call.1
= control target key start
LH: loop header
LB: loop body
LE: loop exit
PB: predicated region body
PF: predicated region fallthrough
CT: control target
= control target key end

     0   :  { %11 = vsyncpa [#allocation3], 0  ;;  %s2280_s0 = inlined_call_operand.hbm [shape: f32[2,128], index: 0, kind: input, shape index: {}]   ;;  %s2281_s1 = inlined_call_operand.hbm [shape: f32[16,128], index: 1, kind: input, shape index: {}]   ;;  %s2282_s2 = inlined_call_operand.hbm [shape: f32[32,128], index: 2, kind: input, shape index: {}]   ;;  %s2283_s3 = inlined_call_operand.vmem [shape: f32[1,128], index: 3, kind: input, shape index: {}]   ;;  %s2284_s4 = inlined_call_operand.vmem [shape: f32[2,32], index: 4, kind: input, shape index: {}]   ;;  %s2285_s5 = inlined_call_operand.vmem [shape: f32[2,32], index: 5, kind: input, shape index: {}]   ;;  %s2286_s6 = inlined_call_operand.hbm [shape: f32[2,256], index: 6, kind: output, shape index: {}]  }
   0x1   :  { %12 = vsyncpa [#allocation6], 0 }
   0x2   :  { %13 = vsyncpa [#allocation4], 0  ;;  %s1975_s21 = smov [#allocation5]  }
   0x3   :  { %s29_s22 = sshll.u32 %s1975_s21, 4  ;;  %s30_s22 = int_to_ptr.vmem [resolvable:$true] %s29_s22 }
   0x4   :  { %s1897_s23 = scalar_lea.vmem %s30_s22, 256  ;;  %p1902_p1 = scmp.lt.s32.totalorder %s30_s22, %s30_s22 }
   0x5   :  { %p1898_p0 = scmp.ne.s32.totalorder %s30_s22, %s1897_s23  ;;  %p1903_p2 = scmp.lt.s32.totalorder %s1897_s23, %s1897_s23 }
   0x7   :  { %p1904_p3 = por %p1903_p2, %p1902_p1 }
   0x9   :  { %p1905_p4 = pnand %p1904_p3, %p1898_p0 }
   0xb   :  { %1908 = shalt.err (!%p1905_p4)
}
   0xc   :  { %s1976_s24 = smov 128   ;;  %s1977_s25 = smov 8  }
   0xd   :  { %35 = dma.hbm_to_vmem [thread:$0]  %s2281_s1, 256, %s30_s22, [#allocation6], %s1976_s24, %s1976_s24, %s1977_s25  }
   0xe   :  { %s1978_s28 = smov [#allocation2]   ;;  %s1979_s30 = smov [#allocation7]  }
   0xf   :  { %s20_s29 = sshll.u32 %s1978_s28, 4  ;;  %s41_s7 = sshll.u32 %s1979_s30, 4  ;;  %s21_s29 = int_to_ptr.vmem [resolvable:$true] %s20_s29  ;;  %s42_s7 = int_to_ptr.vmem [resolvable:$true] %s41_s7 }
  0x10   :  { %s1917_s8 = scalar_lea.vmem %s21_s29, 32  ;;  %p1922_p6 = scmp.lt.s32.totalorder %s21_s29, %s21_s29 }
  0x11   :  { %p1918_p5 = scmp.ne.s32.totalorder %s21_s29, %s1917_s8  ;;  %p1923_p7 = scmp.lt.s32.totalorder %s1917_s8, %s1917_s8 }
  0x13   :  { %p1924_p8 = por %p1923_p7, %p1922_p6 }
  0x15   :  { %p1925_p9 = pnand %p1924_p8, %p1918_p5 }
  0x17   :  { %1928 = shalt.err (!%p1925_p9)
}
  0x18   :  { %23 = dma.hbm_to_vmem [thread:$0]  %s2280_s0, 32, %s21_s29, [#allocation3]  }
  0x19   :  { %s1937_s11 = scalar_lea.vmem %s42_s7, 512  ;;  %p1942_p11 = scmp.lt.s32.totalorder %s42_s7, %s42_s7 }
  0x1a   :  { %p1938_p10 = scmp.ne.s32.totalorder %s42_s7, %s1937_s11  ;;  %p1943_p12 = scmp.lt.s32.totalorder %s1937_s11, %s1937_s11 }
  0x1c   :  { %p1944_p13 = por %p1943_p12, %p1942_p11 }
  0x1e   :  { %p1945_p0 = pnand %p1944_p13, %p1938_p10 }
  0x20   :  { %1948 = shalt.err (!%p1945_p0)
}
  0x21   :  { %47 = dma.hbm_to_vmem [thread:$0]  %s2282_s2, 512, %s42_s7, [#allocation6], %s1976_s24, %s1976_s24, %s1977_s25  }
  0x22   :  { %1969 = dma.done.wait [#allocation3], 32  }
  0x23   :  { %1970 = vsyncadd [#allocation3], 4294967264 }
  0x24   :  { %1971 = dma.done.wait [#allocation6], 768  }
  0x25   :  { %1972 = vsyncadd [#allocation6], 4294966528  ;;  %v1980_v0 = vmov 0.0   ;;  %vm1981_vm0 = vmmov 0   ;;  %v2041_v1 = vld [vmem:[#allocation7 + $0x18] sm:$0xff]  ;;  %v2043_v2 = vld [vmem:[#allocation7 + $0x10] sm:$0xff] }
  0x26   :  { %1665 = vmatprep.subr.mxu0 %v1980_v0  ;;  %1676 = vmatprep.subr.mxu1 %v1980_v0  ;;  %v2045_v3 = vld [vmem:[#allocation5 + $0x8] sm:$0xff]  ;;  %v2049_v4 = vld [vmem:[#allocation5] sm:$0xff]  ;;  %v72_v5 = vld [vmem:[#allocation2] sm:$0x3]  ;;  %vm147_vm1 = vcmask 130048   ;;  %vm73_vm2 = vcmask 261120  }
  0x27   :  { %1680 = vmatprep.mubr.msk.f32.mxu1 %vm1981_vm0, %v1980_v0  ;;  %1673 = vmatprep.mubr.msk.f32.mxu0 %vm1981_vm0, %v1980_v0  ;;  %v2053_v6 = vld [vmem:[#allocation7 + $0x8] sm:$0xff]  ;;  %v2059_v7 = vld [vmem:[#allocation7] sm:$0xff]  ;;  %s1982_s14 = smov 64   ;;  %s1983_s17 = smov 32   ;;  %vm267_vm3 = vcmask 254976   ;;  %vm455_vm4 = vcmask 517376  }
  0x28   :  { %1666 = vmatpush3.msra.mxu0 %v2041_v1  ;;  %1677 = vmatpush3.msra.mxu1 %v2045_v3  ;;  %v70_v8 = vld [vmem:[%s2284_s4] sm:$0x3]  ;;  %s1986_s18 = smov 80   ;;  %s1987_s19 = smov 48   ;;  %vm643_vm5 = vcmask 779776   ;;  %vm820_vm6 = vcmask 1042176  }
  0x29   :  { %1667 = vmatprep.subr.mxu0 %v1980_v0  ;;  %1678 = vmatprep.subr.mxu1 %v1980_v0  ;;  %v2089_v11 = vld [vmem:[%s2283_s3] ss:$0 sm:$0xff]  ;;  %s1984_s3 = smov 112   ;;  %s1988_s20 = smov 16  }
  0x2a   :  { %1668 = vmatpush3.msra.mxu0 %v2043_v2  ;;  %1679 = vmatpush3.msra.mxu1 %v2049_v4  ;;  %v71_v17 = vld [vmem:[%s2285_s5] sm:$0x3]  ;;  %s1985_s5 = smov 96   ;;  %s1990_s21 = smov [#allocation8]  }
  0x2b   :  { %1669 = vmatprep.subr.mxu0 %v1980_v0  ;;  %1681 = vmatmul.mubr.msk.f32.vlgmr.msra.gmra.mxu1 %vm147_vm1, %v72_v5  ;;  %v269_v29 = vld [vmem:[#allocation2] sm:$0x3]  ;;  %s1566_s22 = sshll.u32 %s1990_s21, 4  ;;  %s1567_s22 = int_to_ptr.vmem [resolvable:$true] %s1566_s22 }
  0x2c   :  { %1670 = vmatpush3.msra.mxu0 %v2053_v6  ;;  %1683 = vmatprep.subr.mxu1 %v1980_v0  ;;  %v457_v51 = vld [vmem:[#allocation2] sm:$0x3]  ;;  %s1949_s23 = scalar_lea.vmem %s1567_s22, 64  ;;  %p1954_p2 = scmp.lt.s32.totalorder %s1567_s22, %s1567_s22 }
  0x2d   :  { %1671 = vmatprep.subr.mxu0 %v1980_v0  ;;  %1684 = vmatpush3.msra.mxu1 %v2041_v1  ;;  %p1950_p1 = scmp.ne.s32.totalorder %s1567_s22, %s1949_s23  ;;  %p1955_p3 = scmp.lt.s32.totalorder %s1949_s23, %s1949_s23 }
  0x2e   :  { %1672 = vmatpush3.msra.mxu0 %v2059_v7  ;;  %1685 = vmatprep.subr.mxu1 %v1980_v0 }
  0x2f   :  { %1674 = vmatmul.mubr.msk.f32.vlgmr.msra.gmra.mxu0 %vm73_vm2, %v70_v8  ;;  %1694 = vmatprep.subr.mxu0 %v1980_v0  ;;  %p1956_p4 = por %p1955_p3, %p1954_p2 }
  0x30   :  { %1686 = vmatpush3.msra.mxu1 %v2043_v2  ;;  %1695 = vmatpush3.msra.mxu0 %v2045_v3 }
  0x31   :  { %1687 = vmatprep.subr.mxu1 %v1980_v0  ;;  %1696 = vmatprep.subr.mxu0 %v1980_v0  ;;  %p1957_p5 = pnand %p1956_p4, %p1950_p1 }
  0x32   :  { %1688 = vmatpush3.msra.mxu1 %v2053_v6  ;;  %1697 = vmatpush3.msra.mxu0 %v2049_v4 }
  0x33   :  { %1698 = vmatprep.mubr.msk.f32.mxu0 %vm1981_vm0, %v1980_v0  ;;  %1689 = vmatprep.subr.mxu1 %v1980_v0 }
  0x34   :  { %1690 = vmatpush3.msra.mxu1 %v2059_v7  ;;  %1691 = vmatprep.mubr.msk.f32.mxu1 %vm1981_vm0, %v1980_v0 }
  0x35   :  { %1701 = vmatprep.subr.mxu0 %v1980_v0  ;;  %1712 = vmatprep.subr.mxu1 %v1980_v0 }
  0xeb   :  { %v217_v9 = vpop.f32.mrf.mxu1 }
  0xed   :  { %v1682_v10 = vpop.f32.mrf.mxu1 }
  0xef   :  { %v143_v12 = vpop.f32.mrf.mxu0 }
  0xf0   :  { %v218_v13 = vadd.f32 %v217_v9, %v143_v12 }
  0xf1   :  { %v1675_v14 = vpop.f32.mrf.mxu0 }
  0xf2   :  { %v227_v15 = vadd.f32 %v2089_v11, %v218_v13 }
  0xf4   :  { %1825 = vtanh.f32 %v227_v15  ;;  %v1579_v18 = vmul.f32 -1.442695, %v227_v15 }
  0xf6   :  { %1827 = vpow2.f32 %v1579_v18 }
 0x101   :  { %v1826_v16 = vpop.eup %1825 }
 0x102   :  { %241 = vrot.lane.b32.xlu0 %v1826_v16, %s1982_s14 }
 0x103   :  { %v1828_v19 = vpop.eup %1827 }
 0x104   :  { %v231_v20 = vadd.f32 1.0, %v1828_v19 }
 0x106   :  { %236 = vrot.lane.b32.xlu0 %v71_v17, %s1983_s17  ;;  %1829 = vrcp.f32 %v231_v20  ;;  %v645_v17 = vld [vmem:[#allocation2] sm:$0x3] }
 0x113   :  { %v1830_v21 = vpop.eup %1829 }
 0x174   :  { %v242_v22 = vpop.permute.xlu0 %241 }
 0x175   :  { %v244_v23 = vmul.f32 %v1830_v21, %v242_v22 }
 0x177   :  { %246 = vrot.lane.b32.xlu1 %v244_v23, %s1983_s17 }
 0x178   :  { %v237_v24 = vpop.permute.xlu0 %236 }
 0x179   :  { %v239_v25 = vmul.f32 %v1830_v21, %v237_v24 }
 0x1e9   :  { %v247_v26 = vpop.permute.xlu1 %246 }
 0x1ea   :  { %v249_v27 = vadd.f32 %v247_v26, %v239_v25 }
 0x1ec   :  { %1831 = vtanh.f32 %v249_v27 }
 0x1f9   :  { %v1832_v28 = vpop.eup %1831 }
 0x1fa   :  { %252 = vrot.lane.b32.xlu1 %v1832_v28, %s1982_s14 }
 0x1fe   :  { %345 = vrot.lane.b32.xlu1 %v269_v29, %s1984_s3 }
 0x26c   :  { %v253_v30 = vpop.permute.xlu1 %252 }
 0x26d   :  { %v2099_v31 = vmul.f32 %v1830_v21, %v253_v30 }
 0x26f   :  { %270 = vrot.lane.b32.xlu0 %v2099_v31, %s1983_s17 }
 0x270   :  { %v346_v32 = vpop.permute.xlu1 %345 }
 0x271   :  { %1699 = vmatmul.mubr.msk.f32.vlgmr.msra.gmra.mxu0 %vm147_vm1, %v346_v32 }
 0x272   :  { %1702 = vmatpush3.msra.mxu0 %v2041_v1  ;;  %1709 = vmatprep.mubr.msk.f32.mxu0 %vm1981_vm0, %v1980_v0 }
 0x273   :  { %1703 = vmatprep.subr.mxu0 %v1980_v0 }
 0x274   :  { %1704 = vmatpush3.msra.mxu0 %v2043_v2 }
 0x275   :  { %1705 = vmatprep.subr.mxu0 %v1980_v0 }
 0x276   :  { %1706 = vmatpush3.msra.mxu0 %v2053_v6 }
 0x277   :  { %1707 = vmatprep.subr.mxu0 %v1980_v0 }
 0x278   :  { %1708 = vmatpush3.msra.mxu0 %v2059_v7 }
 0x279   :  { %1730 = vmatprep.subr.mxu0 %v1980_v0 }
 0x2e1   :  { %v271_v33 = vpop.permute.xlu0 %270 }
 0x2e2   :  { %1692 = vmatmul.mubr.msk.f32.vlgmr.msra.gmra.mxu1 %vm73_vm2, %v271_v33 }
 0x2e3   :  { %1713 = vmatpush3.msra.mxu1 %v2045_v3  ;;  %1716 = vmatprep.mubr.msk.f32.mxu1 %vm1981_vm0, %v1980_v0 }
 0x2e4   :  { %1714 = vmatprep.subr.mxu1 %v1980_v0 }
 0x2e5   :  { %1715 = vmatpush3.msra.mxu1 %v2049_v4 }
 0x2e6   :  { %1719 = vmatprep.subr.mxu1 %v1980_v0 }
 0x331   :  { %v415_v34 = vpop.f32.mrf.mxu0 }
 0x333   :  { %v1700_v35 = vpop.f32.mrf.mxu0 }
 0x3a2   :  { %v340_v36 = vpop.f32.mrf.mxu1 }
 0x3a3   :  { %v416_v37 = vadd.f32 %v415_v34, %v340_v36 }
 0x3a4   :  { %v1693_v38 = vpop.f32.mrf.mxu1 }
 0x3a5   :  { %v419_v39 = vadd.f32 %v2089_v11, %v416_v37 }
 0x3a7   :  { %1833 = vtanh.f32 %v419_v39  ;;  %v1582_v41 = vmul.f32 -1.442695, %v419_v39 }
 0x3a9   :  { %1835 = vpow2.f32 %v1582_v41 }
 0x3b4   :  { %v1834_v40 = vpop.eup %1833 }
 0x3b5   :  { %429 = vrot.lane.b32.xlu0 %v1834_v40, %s1982_s14  ;;  %v822_v40 = vld [vmem:[#allocation2] sm:$0x3] }
 0x3b6   :  { %v1836_v42 = vpop.eup %1835 }
 0x3b7   :  { %v423_v43 = vadd.f32 1.0, %v1836_v42 }
 0x3b9   :  { %1837 = vrcp.f32 %v423_v43 }
 0x3c6   :  { %v1838_v44 = vpop.eup %1837 }
 0x3c7   :  { %v427_v47 = vmul.f32 %v1838_v44, %v249_v27 }
 0x427   :  { %v430_v45 = vpop.permute.xlu0 %429 }
 0x428   :  { %v432_v46 = vmul.f32 %v1838_v44, %v430_v45 }
 0x42a   :  { %434 = vrot.lane.b32.xlu1 %v432_v46, %s1983_s17 }
 0x49c   :  { %v435_v48 = vpop.permute.xlu1 %434 }
 0x49d   :  { %v437_v49 = vadd.f32 %v435_v48, %v427_v47 }
 0x49f   :  { %1839 = vtanh.f32 %v437_v49 }
 0x4ac   :  { %v1840_v50 = vpop.eup %1839 }
 0x4ad   :  { %440 = vrot.lane.b32.xlu0 %v1840_v50, %s1982_s14 }
 0x4b1   :  { %533 = vrot.lane.b32.xlu0 %v457_v51, %s1985_s5 }
 0x51f   :  { %v441_v52 = vpop.permute.xlu0 %440 }
 0x520   :  { %v2126_v53 = vmul.f32 %v1838_v44, %v441_v52 }
 0x522   :  { %458 = vrot.lane.b32.xlu1 %v2126_v53, %s1983_s17 }
 0x523   :  { %v534_v54 = vpop.permute.xlu0 %533 }
 0x524   :  { %1717 = vmatmul.mubr.msk.f32.vlgmr.msra.gmra.mxu1 %vm147_vm1, %v534_v54 }
 0x525   :  { %1720 = vmatpush3.msra.mxu1 %v2041_v1  ;;  %1727 = vmatprep.mubr.msk.f32.mxu1 %vm1981_vm0, %v1980_v0 }
 0x526   :  { %1721 = vmatprep.subr.mxu1 %v1980_v0 }
 0x527   :  { %1722 = vmatpush3.msra.mxu1 %v2043_v2 }
 0x528   :  { %1723 = vmatprep.subr.mxu1 %v1980_v0 }
 0x529   :  { %1724 = vmatpush3.msra.mxu1 %v2053_v6 }
 0x52a   :  { %1725 = vmatprep.subr.mxu1 %v1980_v0 }
 0x52b   :  { %1726 = vmatpush3.msra.mxu1 %v2059_v7 }
 0x52c   :  { %1748 = vmatprep.subr.mxu1 %v1980_v0 }
 0x594   :  { %v459_v55 = vpop.permute.xlu1 %458 }
 0x595   :  { %1710 = vmatmul.mubr.msk.f32.vlgmr.msra.gmra.mxu0 %vm73_vm2, %v459_v55 }
 0x596   :  { %1731 = vmatpush3.msra.mxu0 %v2045_v3  ;;  %1734 = vmatprep.mubr.msk.f32.mxu0 %vm1981_vm0, %v1980_v0 }
 0x597   :  { %1732 = vmatprep.subr.mxu0 %v1980_v0 }
 0x598   :  { %1733 = vmatpush3.msra.mxu0 %v2049_v4 }
 0x599   :  { %1737 = vmatprep.subr.mxu0 %v1980_v0 }
 0x5e4   :  { %v603_v56 = vpop.f32.mrf.mxu1 }
 0x5e6   :  { %v1718_v57 = vpop.f32.mrf.mxu1 }
 0x655   :  { %v528_v58 = vpop.f32.mrf.mxu0 }
 0x656   :  { %v604_v59 = vadd.f32 %v603_v56, %v528_v58 }
 0x657   :  { %v1711_v60 = vpop.f32.mrf.mxu0 }
 0x658   :  { %v607_v61 = vadd.f32 %v2089_v11, %v604_v59 }
 0x65a   :  { %1841 = vtanh.f32 %v607_v61  ;;  %v1585_v63 = vmul.f32 -1.442695, %v607_v61 }
 0x65c   :  { %1843 = vpow2.f32 %v1585_v63  ;;  %v1010_v63 = vld [vmem:[#allocation2] sm:$0x3] }
 0x667   :  { %v1842_v62 = vpop.eup %1841 }
 0x668   :  { %617 = vrot.lane.b32.xlu1 %v1842_v62, %s1982_s14 }
 0x669   :  { %v1844_v5 = vpop.eup %1843 }
 0x66a   :  { %v611_v8 = vadd.f32 1.0, %v1844_v5 }
 0x66c   :  { %1845 = vrcp.f32 %v611_v8 }
 0x679   :  { %v1846_v9 = vpop.eup %1845 }
 0x67a   :  { %v615_v13 = vmul.f32 %v1846_v9, %v437_v49 }
 0x6da   :  { %v618_v10 = vpop.permute.xlu1 %617 }
 0x6db   :  { %v620_v12 = vmul.f32 %v1846_v9, %v618_v10 }
 0x6dd   :  { %622 = vrot.lane.b32.xlu0 %v620_v12, %s1983_s17 }
 0x74f   :  { %v623_v14 = vpop.permute.xlu0 %622 }
 0x750   :  { %v625_v15 = vadd.f32 %v623_v14, %v615_v13 }
 0x752   :  { %1847 = vtanh.f32 %v625_v15 }
 0x75f   :  { %v1848_v16 = vpop.eup %1847 }
 0x760   :  { %628 = vrot.lane.b32.xlu1 %v1848_v16, %s1982_s14 }
 0x764   :  { %721 = vrot.lane.b32.xlu1 %v645_v17, %s1986_s18 }
 0x7d2   :  { %v629_v18 = vpop.permute.xlu1 %628 }
 0x7d3   :  { %v2152_v19 = vmul.f32 %v1846_v9, %v629_v18 }
 0x7d5   :  { %646 = vrot.lane.b32.xlu0 %v2152_v19, %s1983_s17 }
 0x7d6   :  { %v722_v20 = vpop.permute.xlu1 %721 }
 0x7d7   :  { %1735 = vmatmul.mubr.msk.f32.vlgmr.msra.gmra.mxu0 %vm147_vm1, %v722_v20 }
 0x7d8   :  { %1738 = vmatpush3.msra.mxu0 %v2041_v1  ;;  %1745 = vmatprep.mubr.msk.f32.mxu0 %vm1981_vm0, %v1980_v0 }
 0x7d9   :  { %1739 = vmatprep.subr.mxu0 %v1980_v0 }
 0x7da   :  { %1740 = vmatpush3.msra.mxu0 %v2043_v2 }
 0x7db   :  { %1741 = vmatprep.subr.mxu0 %v1980_v0 }
 0x7dc   :  { %1742 = vmatpush3.msra.mxu0 %v2053_v6 }
 0x7dd   :  { %1743 = vmatprep.subr.mxu0 %v1980_v0 }
 0x7de   :  { %1744 = vmatpush3.msra.mxu0 %v2059_v7 }
 0x7df   :  { %1766 = vmatprep.subr.mxu0 %v1980_v0 }
 0x847   :  { %v647_v21 = vpop.permute.xlu0 %646 }
 0x848   :  { %1728 = vmatmul.mubr.msk.f32.vlgmr.msra.gmra.mxu1 %vm73_vm2, %v647_v21 }
 0x849   :  { %1749 = vmatpush3.msra.mxu1 %v2045_v3  ;;  %1752 = vmatprep.mubr.msk.f32.mxu1 %vm1981_vm0, %v1980_v0 }
 0x84a   :  { %1750 = vmatprep.subr.mxu1 %v1980_v0 }
 0x84b   :  { %1751 = vmatpush3.msra.mxu1 %v2049_v4 }
 0x84c   :  { %1755 = vmatprep.subr.mxu1 %v1980_v0 }
 0x897   :  { %v791_v22 = vpop.f32.mrf.mxu0 }
 0x899   :  { %v1736_v23 = vpop.f32.mrf.mxu0 }
 0x908   :  { %v716_v24 = vpop.f32.mrf.mxu1 }
 0x909   :  { %v792_v25 = vadd.f32 %v791_v22, %v716_v24 }
 0x90a   :  { %v1729_v26 = vpop.f32.mrf.mxu1 }
 0x90b   :  { %v795_v27 = vadd.f32 %v2089_v11, %v792_v25 }
 0x90d   :  { %1849 = vtanh.f32 %v795_v27  ;;  %v1588_v29 = vmul.f32 -1.442695, %v795_v27 }
 0x90f   :  { %1851 = vpow2.f32 %v1588_v29 }
 0x91a   :  { %v1850_v28 = vpop.eup %1849 }
 0x91b   :  { %805 = vrot.lane.b32.xlu0 %v1850_v28, %s1982_s14 }
 0x91c   :  { %v1852_v30 = vpop.eup %1851 }
 0x91d   :  { %v799_v32 = vadd.f32 1.0, %v1852_v30  ;;  %v1197_v30 = vld [vmem:[#allocation2] sm:$0x3] }
 0x91f   :  { %1853 = vrcp.f32 %v799_v32 }
 0x92c   :  { %v1854_v33 = vpop.eup %1853 }
 0x92d   :  { %v803_v36 = vmul.f32 %v1854_v33, %v625_v15 }
 0x98d   :  { %v806_v34 = vpop.permute.xlu0 %805 }
 0x98e   :  { %v808_v35 = vmul.f32 %v1854_v33, %v806_v34 }
 0x990   :  { %810 = vrot.lane.b32.xlu1 %v808_v35, %s1983_s17 }
 0xa02   :  { %v811_v37 = vpop.permute.xlu1 %810 }
 0xa03   :  { %v813_v38 = vadd.f32 %v811_v37, %v803_v36 }
 0xa05   :  { %1855 = vtanh.f32 %v813_v38 }
 0xa12   :  { %v1856_v39 = vpop.eup %1855 }
 0xa13   :  { %816 = vrot.lane.b32.xlu0 %v1856_v39, %s1982_s14 }
 0xa17   :  { %899 = vrot.lane.b32.xlu0 %v822_v40, %s1982_s14 }
 0xa85   :  { %v817_v41 = vpop.permute.xlu0 %816 }
 0xa86   :  { %v2179_v42 = vmul.f32 %v1854_v33, %v817_v41 }
 0xa88   :  { %824 = vrot.lane.b32.xlu1 %v2179_v42, %s1983_s17 }
 0xa89   :  { %v900_v43 = vpop.permute.xlu0 %899 }
 0xa8a   :  { %1753 = vmatmul.mubr.msk.f32.vlgmr.msra.gmra.mxu1 %vm147_vm1, %v900_v43 }
 0xa8b   :  { %1756 = vmatpush3.msra.mxu1 %v2041_v1  ;;  %1763 = vmatprep.mubr.msk.f32.mxu1 %vm1981_vm0, %v1980_v0 }
 0xa8c   :  { %1757 = vmatprep.subr.mxu1 %v1980_v0 }
 0xa8d   :  { %1758 = vmatpush3.msra.mxu1 %v2043_v2 }
 0xa8e   :  { %1759 = vmatprep.subr.mxu1 %v1980_v0 }
 0xa8f   :  { %1760 = vmatpush3.msra.mxu1 %v2053_v6 }
 0xa90   :  { %1761 = vmatprep.subr.mxu1 %v1980_v0 }
 0xa91   :  { %1762 = vmatpush3.msra.mxu1 %v2059_v7 }
 0xa92   :  { %1784 = vmatprep.subr.mxu1 %v1980_v0 }
 0xafa   :  { %v825_v44 = vpop.permute.xlu1 %824 }
 0xafb   :  { %1746 = vmatmul.mubr.msk.f32.vlgmr.msra.gmra.mxu0 %vm73_vm2, %v825_v44 }
 0xafc   :  { %1767 = vmatpush3.msra.mxu0 %v2045_v3  ;;  %1770 = vmatprep.mubr.msk.f32.mxu0 %vm1981_vm0, %v1980_v0 }
 0xafd   :  { %1768 = vmatprep.subr.mxu0 %v1980_v0 }
 0xafe   :  { %1769 = vmatpush3.msra.mxu0 %v2049_v4 }
 0xaff   :  { %1773 = vmatprep.subr.mxu0 %v1980_v0 }
 0xb4a   :  { %v969_v45 = vpop.f32.mrf.mxu1 }
 0xb4c   :  { %v1754_v46 = vpop.f32.mrf.mxu1 }
 0xbbb   :  { %v894_v47 = vpop.f32.mrf.mxu0 }
 0xbbc   :  { %v970_v48 = vadd.f32 %v969_v45, %v894_v47  ;;  %v1384_v47 = vld [vmem:[#allocation2] sm:$0x3] }
 0xbbd   :  { %v1747_v49 = vpop.f32.mrf.mxu0 }
 0xbbe   :  { %v973_v50 = vadd.f32 %v2089_v11, %v970_v48 }
 0xbc0   :  { %1857 = vtanh.f32 %v973_v50  ;;  %v1591_v52 = vmul.f32 -1.442695, %v973_v50 }
 0xbc2   :  { %1859 = vpow2.f32 %v1591_v52 }
 0xbcd   :  { %v1858_v51 = vpop.eup %1857 }
 0xbce   :  { %983 = vrot.lane.b32.xlu1 %v1858_v51, %s1982_s14 }
 0xbcf   :  { %v1860_v54 = vpop.eup %1859 }
 0xbd0   :  { %v977_v55 = vadd.f32 1.0, %v1860_v54 }
 0xbd2   :  { %1861 = vrcp.f32 %v977_v55 }
 0xbdf   :  { %v1862_v56 = vpop.eup %1861 }
 0xbe0   :  { %v981_v59 = vmul.f32 %v1862_v56, %v813_v38 }
 0xc40   :  { %v984_v57 = vpop.permute.xlu1 %983 }
 0xc41   :  { %v986_v58 = vmul.f32 %v1862_v56, %v984_v57 }
 0xc43   :  { %988 = vrot.lane.b32.xlu0 %v986_v58, %s1983_s17 }
 0xcb5   :  { %v989_v60 = vpop.permute.xlu0 %988 }
 0xcb6   :  { %v991_v61 = vadd.f32 %v989_v60, %v981_v59  ;;  %v1989_v59 = vmov 1983009808  }
 0xcb7   :  { %v258_v60 = vunpack.c.l.s4 %v1989_v59 }
 0xcb8   :  { %1863 = vtanh.f32 %v991_v61 }
 0xcc5   :  { %v1864_v62 = vpop.eup %1863 }
 0xcc6   :  { %994 = vrot.lane.b32.xlu1 %v1864_v62, %s1982_s14  ;;  %v259_v62 = vunpack.c.0.s8 %v258_v60 }
 0xcca   :  { %1086 = vrot.lane.b32.xlu1 %v1010_v63, %s1987_s19 }
 0xd38   :  { %v995_v5 = vpop.permute.xlu1 %994 }
 0xd39   :  { %v2205_v8 = vmul.f32 %v1862_v56, %v995_v5 }
 0xd3b   :  { %1011 = vrot.lane.b32.xlu0 %v2205_v8, %s1983_s17 }
 0xd3c   :  { %v1087_v9 = vpop.permute.xlu1 %1086 }
 0xd3d   :  { %1771 = vmatmul.mubr.msk.f32.vlgmr.msra.gmra.mxu0 %vm147_vm1, %v1087_v9 }
 0xd3e   :  { %1774 = vmatpush3.msra.mxu0 %v2041_v1  ;;  %1781 = vmatprep.mubr.msk.f32.mxu0 %vm1981_vm0, %v1980_v0 }
 0xd3f   :  { %1775 = vmatprep.subr.mxu0 %v1980_v0 }
 0xd40   :  { %1776 = vmatpush3.msra.mxu0 %v2043_v2 }
 0xd41   :  { %1777 = vmatprep.subr.mxu0 %v1980_v0 }
 0xd42   :  { %1778 = vmatpush3.msra.mxu0 %v2053_v6 }
 0xd43   :  { %1779 = vmatprep.subr.mxu0 %v1980_v0 }
 0xd44   :  { %1780 = vmatpush3.msra.mxu0 %v2059_v7 }
 0xd45   :  { %1802 = vmatprep.subr.mxu0 %v1980_v0 }
 0xdad   :  { %v1012_v10 = vpop.permute.xlu0 %1011 }
 0xdae   :  { %1764 = vmatmul.mubr.msk.f32.vlgmr.msra.gmra.mxu1 %vm73_vm2, %v1012_v10 }
 0xdaf   :  { %1785 = vmatpush3.msra.mxu1 %v2045_v3  ;;  %1788 = vmatprep.mubr.msk.f32.mxu1 %vm1981_vm0, %v1980_v0 }
 0xdb0   :  { %1786 = vmatprep.subr.mxu1 %v1980_v0 }
 0xdb1   :  { %1787 = vmatpush3.msra.mxu1 %v2049_v4 }
 0xdb2   :  { %1791 = vmatprep.subr.mxu1 %v1980_v0 }
 0xdfd   :  { %v1156_v12 = vpop.f32.mrf.mxu0 }
 0xdff   :  { %v1772_v13 = vpop.f32.mrf.mxu0 }
 0xe6e   :  { %v1081_v14 = vpop.f32.mrf.mxu1 }
 0xe6f   :  { %v1157_v15 = vadd.f32 %v1156_v12, %v1081_v14 }
 0xe70   :  { %v1765_v16 = vpop.f32.mrf.mxu1 }
 0xe71   :  { %v1160_v17 = vadd.f32 %v2089_v11, %v1157_v15 }
 0xe73   :  { %1865 = vtanh.f32 %v1160_v17  ;;  %v1594_v20 = vmul.f32 -1.442695, %v1160_v17 }
 0xe75   :  { %1867 = vpow2.f32 %v1594_v20 }
 0xe80   :  { %v1866_v18 = vpop.eup %1865 }
 0xe81   :  { %1170 = vrot.lane.b32.xlu0 %v1866_v18, %s1982_s14 }
 0xe82   :  { %v1868_v21 = vpop.eup %1867 }
 0xe83   :  { %v1164_v22 = vadd.f32 1.0, %v1868_v21 }
 0xe85   :  { %1869 = vrcp.f32 %v1164_v22 }
 0xe92   :  { %v1870_v23 = vpop.eup %1869 }
 0xe93   :  { %v1168_v26 = vmul.f32 %v1870_v23, %v991_v61  ;;  %v260_v61 = vlaneseq }
 0xe95   :  { %v261_v63 = vshrl.u32 %v260_v61, 7 }
 0xe97   :  { %v262_v5 = vsub.s32 %v259_v62, %v261_v63 }
 0xe99   :  { %v263_v10 = vrot.slane %v2099_v31, %v262_v5  ;;  %v451_v12 = vrot.slane %v2126_v53, %v262_v5  ;;  %v1005_v31 = vrot.slane %v2205_v8, %v262_v5  ;;  %v639_v21 = vrot.slane %v2152_v19, %v262_v5 }
 0xef3   :  { %v1171_v24 = vpop.permute.xlu0 %1170 }
 0xef4   :  { %v1173_v25 = vmul.f32 %v1870_v23, %v1171_v24 }
 0xef6   :  { %1175 = vrot.lane.b32.xlu1 %v1173_v25, %s1983_s17 }
 0xf68   :  { %v1176_v27 = vpop.permute.xlu1 %1175 }
 0xf69   :  { %v1178_v28 = vadd.f32 %v1176_v27, %v1168_v26 }
 0xf6b   :  { %1871 = vtanh.f32 %v1178_v28 }
 0xf78   :  { %v1872_v29 = vpop.eup %1871 }
 0xf79   :  { %1181 = vrot.lane.b32.xlu0 %v1872_v29, %s1982_s14 }
 0xf7d   :  { %1273 = vrot.lane.b32.xlu0 %v1197_v30, %s1983_s17 }
 0xfeb   :  { %v1182_v32 = vpop.permute.xlu0 %1181 }
 0xfec   :  { %v2232_v33 = vmul.f32 %v1870_v23, %v1182_v32 }
 0xfee   :  { %1198 = vrot.lane.b32.xlu1 %v2232_v33, %s1983_s17  ;;  %v1192_v20 = vrot.slane %v2232_v33, %v262_v5 }
 0xfef   :  { %v1274_v34 = vpop.permute.xlu0 %1273 }
 0xff0   :  { %1789 = vmatmul.mubr.msk.f32.vlgmr.msra.gmra.mxu1 %vm147_vm1, %v1274_v34 }
 0xff1   :  { %1792 = vmatpush3.msra.mxu1 %v2041_v1  ;;  %1799 = vmatprep.mubr.msk.f32.mxu1 %vm1981_vm0, %v1980_v0 }
 0xff2   :  { %1793 = vmatprep.subr.mxu1 %v1980_v0 }
 0xff3   :  { %1794 = vmatpush3.msra.mxu1 %v2043_v2 }
 0xff4   :  { %1795 = vmatprep.subr.mxu1 %v1980_v0 }
 0xff5   :  { %1796 = vmatpush3.msra.mxu1 %v2053_v6 }
 0xff6   :  { %1797 = vmatprep.subr.mxu1 %v1980_v0 }
 0xff7   :  { %1798 = vmatpush3.msra.mxu1 %v2059_v7 }
0x1060   :  { %v1199_v35 = vpop.permute.xlu1 %1198 }
0x1061   :  { %1782 = vmatmul.mubr.msk.f32.vlgmr.msra.gmra.mxu0 %vm73_vm2, %v1199_v35 }
0x1062   :  { %1803 = vmatpush3.msra.mxu0 %v2045_v3  ;;  %1806 = vmatprep.mubr.msk.f32.mxu0 %vm1981_vm0, %v1980_v0 }
0x1063   :  { %1804 = vmatprep.subr.mxu0 %v1980_v0 }
0x1064   :  { %1805 = vmatpush3.msra.mxu0 %v2049_v4 }
0x10b0   :  { %v1343_v1 = vpop.f32.mrf.mxu1 }
0x10b2   :  { %v1790_v2 = vpop.f32.mrf.mxu1 }
0x1121   :  { %v1268_v36 = vpop.f32.mrf.mxu0 }
0x1122   :  { %v1344_v6 = vadd.f32 %v1343_v1, %v1268_v36 }
0x1123   :  { %v1783_v37 = vpop.f32.mrf.mxu0 }
0x1124   :  { %v1347_v38 = vadd.f32 %v2089_v11, %v1344_v6 }
0x1126   :  { %1873 = vtanh.f32 %v1347_v38  ;;  %v1597_v39 = vmul.f32 -1.442695, %v1347_v38 }
0x1128   :  { %1875 = vpow2.f32 %v1597_v39 }
0x1133   :  { %v1874_v7 = vpop.eup %1873 }
0x1134   :  { %1357 = vrot.lane.b32.xlu1 %v1874_v7, %s1982_s14 }
0x1135   :  { %v1876_v3 = vpop.eup %1875 }
0x1136   :  { %v1351_v40 = vadd.f32 1.0, %v1876_v3 }
0x1138   :  { %1877 = vrcp.f32 %v1351_v40 }
0x1145   :  { %v1878_v41 = vpop.eup %1877 }
0x1146   :  { %v1355_v4 = vmul.f32 %v1878_v41, %v1178_v28 }
0x11a6   :  { %v1358_v0 = vpop.permute.xlu1 %1357 }
0x11a7   :  { %v1360_v43 = vmul.f32 %v1878_v41, %v1358_v0 }
0x11a9   :  { %1362 = vrot.lane.b32.xlu0 %v1360_v43, %s1983_s17 }
0x121b   :  { %v1363_v44 = vpop.permute.xlu0 %1362 }
0x121c   :  { %v1365_v45 = vadd.f32 %v1363_v44, %v1355_v4 }
0x121e   :  { %1879 = vtanh.f32 %v1365_v45 }
0x122b   :  { %v1880_v46 = vpop.eup %1879 }
0x122c   :  { %1368 = vrot.lane.b32.xlu1 %v1880_v46, %s1982_s14 }
0x1230   :  { %1460 = vrot.lane.b32.xlu1 %v1384_v47, %s1988_s20 }
0x129e   :  { %v1369_v48 = vpop.permute.xlu1 %1368 }
0x129f   :  { %v1371_v49 = vmul.f32 %v1878_v41, %v1369_v48 }
0x12a1   :  { %1385 = vrot.lane.b32.xlu0 %v1371_v49, %s1983_s17  ;;  %v1379_v19 = vrot.slane %v1371_v49, %v262_v5 }
0x12a2   :  { %v1461_v50 = vpop.permute.xlu1 %1460 }
0x12a3   :  { %1807 = vmatmul.mubr.msk.f32.vlgmr.msra.gmra.mxu0 %vm147_vm1, %v1461_v50 }
0x1313   :  { %v1386_v51 = vpop.permute.xlu0 %1385 }
0x1314   :  { %1800 = vmatmul.mubr.msk.f32.vlgmr.msra.gmra.mxu1 %vm73_vm2, %v1386_v51 }
0x1363   :  { %v1530_v52 = vpop.f32.mrf.mxu0 }
0x1365   :  { %v1808_v54 = vpop.f32.mrf.mxu0 }
0x13d4   :  { %v1455_v55 = vpop.f32.mrf.mxu1 }
0x13d5   :  { %v1531_v56 = vadd.f32 %v1530_v52, %v1455_v55 }
0x13d6   :  { %v1801_v57 = vpop.f32.mrf.mxu1 }
0x13d7   :  { %v1534_v58 = vadd.f32 %v2089_v11, %v1531_v56 }
0x13d9   :  { %1881 = vtanh.f32 %v1534_v58  ;;  %v1600_v13 = vmul.f32 -1.442695, %v1534_v58 }
0x13db   :  { %1883 = vpow2.f32 %v1600_v13 }
0x13e6   :  { %v1882_v9 = vpop.eup %1881 }
0x13e7   :  { %1544 = vrot.lane.b32.xlu0 %v1882_v9, %s1982_s14 }
0x13e8   :  { %v1884_v11 = vpop.eup %1883 }
0x13e9   :  { %v1538_v14 = vadd.f32 1.0, %v1884_v11 }
0x13eb   :  { %264 = vrot.lane.b32.xlu0 %v263_v10, %s1983_s17  ;;  %1885 = vrcp.f32 %v1538_v14 }
0x13ef   :  { %452 = vrot.lane.b32.xlu0 %v451_v12, %s1982_s14 }
0x13f8   :  { %v1886_v15 = vpop.eup %1885 }
0x13f9   :  { %v1542_v22 = vmul.f32 %v1886_v15, %v1365_v45 }
0x1459   :  { %v1545_v16 = vpop.permute.xlu0 %1544 }
0x145a   :  { %v1547_v17 = vmul.f32 %v1886_v15, %v1545_v16 }
0x145c   :  { %1549 = vrot.lane.b32.xlu1 %v1547_v17, %s1983_s17 }
0x145d   :  { %v265_v18 = vpop.permute.xlu0 %264 }
0x145e   :  { %268 = vst.msk [vmem:[#allocation8] sm:$0x3] %vm267_vm3, %v265_v18 }
0x1460   :  { %1006 = vrot.lane.b32.xlu1 %v1005_v31, %s1983_s17 }
0x1461   :  { %v453_v53 = vpop.permute.xlu0 %452 }
0x1462   :  { %456 = vst.msk [vmem:[#allocation8] sm:$0x3] %vm455_vm4, %v453_v53 }
0x1464   :  { %1193 = vrot.lane.b32.xlu1 %v1192_v20, %s1982_s14 }
0x1468   :  { %640 = vrot.lane.b32.xlu1 %v639_v21, %s1985_s5 }
0x14ce   :  { %v1550_v23 = vpop.permute.xlu1 %1549 }
0x14cf   :  { %v1552_v24 = vadd.f32 %v1550_v23, %v1542_v22 }
0x14d1   :  { %1887 = vtanh.f32 %v1552_v24 }
0x14d2   :  { %v1007_v8 = vpop.permute.xlu1 %1006 }
0x14d3   :  { %1009 = vst.msk [vmem:[#allocation8 + $0x2] sm:$0x3] %vm267_vm3, %v1007_v8 }
0x14d6   :  { %v1194_v25 = vpop.permute.xlu1 %1193 }
0x14d7   :  { %1196 = vst.msk [vmem:[#allocation8 + $0x2] sm:$0x3] %vm455_vm4, %v1194_v25 }
0x14da   :  { %v641_v26 = vpop.permute.xlu1 %640 }
0x14db   :  { %644 = vst.msk [vmem:[#allocation8] sm:$0x3] %vm643_vm5, %v641_v26 }
0x14dc   :  { %821 = vst.msk [vmem:[#allocation8] sm:$0x3] %vm820_vm6, %v2179_v42 }
0x14de   :  { %v1888_v27 = vpop.eup %1887 }
0x14df   :  { %1555 = vrot.lane.b32.xlu0 %v1888_v27, %s1982_s14 }
0x14e3   :  { %1380 = vrot.lane.b32.xlu0 %v1379_v19, %s1985_s5 }
0x1551   :  { %v1556_v28 = vpop.permute.xlu0 %1555 }
0x1552   :  { %v1558_v29 = vmul.f32 %v1886_v15, %v1556_v28 }
0x1555   :  { %v1381_v30 = vpop.permute.xlu0 %1380 }
0x1556   :  { %1383 = vst.msk [vmem:[#allocation8 + $0x2] sm:$0x3] %vm643_vm5, %v1381_v30 }
0x1557   :  { %1559 = vst.msk [vmem:[#allocation8 + $0x2] sm:$0x3] %vm820_vm6, %v1558_v29 }
0x1558   :  { %1960 = shalt.err (!%p1957_p5)
}
0x1559   :  { %1569 = dma.vmem_to_hbm [thread:$0]  %s1567_s22, 64, %s2286_s6, [#allocation4]  }
0x155a   :  { %1973 = dma.done.wait [#allocation4], 64  }
0x155b   :  { %1974 = vsyncadd [#allocation4], 4294967232 }
0x155c   :  { %1573 = vsyncpa [#allocation3], 1 }
0x155d   :  { %1574 = vsyncpa [#allocation6], 1 }
0x155e   :  { %1575 = vsyncpa [#allocation4], 1 }

</bundles_post_ra>
